<compile_context>
chip_gen: v7x
topology: tpu7x:2x2x1
jax: 0.10.0
libtpu: 0.0.40
codegen_flags: <defaults>
</compile_context>

<pallas_src>
import functools

import jax
import jax.numpy as jnp
from jax import lax
from jax.experimental import pallas as pl
from jax.experimental.pallas import tpu as pltpu


def _round_down(x, m):
    return (x // m) * m


def _ce_rows_kernel(x_ref, t_ref, ce_ref, *, n_total, tile_n):
    """Per-tile: per-row cross-entropy (logsumexp - target logit), masked for padding."""
    i = pl.program_id(0)

    x = x_ref[...].astype(jnp.float32)      # (tile_n, C) logits (upcast if bf16 input)
    tgt = t_ref[...]                        # (tile_n, 1) int32 targets

    # Mask rows past the true batch size (last, padded grid step).
    row_ids = i * tile_n + lax.broadcasted_iota(jnp.int32, (tile_n, 1), 0)   # (tile_n, 1)
    valid = row_ids < n_total

    # Zero out garbage rows before transcendental work (keeps NaN/Inf out).
    x = jnp.where(valid, x, jnp.float32(0.0))

    # Numerically stable logsumexp per row (lane reduce).
    m = jnp.max(x, axis=-1, keepdims=True)                                    # (tile_n, 1)
    lse = m + jnp.log(jnp.sum(jnp.exp(x - m), axis=-1, keepdims=True))        # (tile_n, 1)

    # Gather the target logit via one-hot compare (no dynamic gather on TPU).
    # TODO(synk): out-of-range targets (e.g. torch ignore_index=-100) are not ignored;
    # they contribute tgt_logit=0, matching neither torch's error nor ignore semantics.
    cols = lax.broadcasted_iota(jnp.int32, x.shape, 1)                        # (tile_n, C)
    tgt_logit = jnp.sum(jnp.where(cols == tgt, x, jnp.float32(0.0)),
                        axis=-1, keepdims=True)                               # (tile_n, 1)

    # Per-row CE; padded rows contribute exactly 0 to the wrapper-side sum.
    ce_ref[...] = jnp.where(valid, lse - tgt_logit, jnp.float32(0.0))


def focal_loss(inputs, targets, *, alpha=1.0, gamma=2.0, tile_n=None,
               target_tile_bytes=2 * 1024 * 1024):
    """inputs: (N, C) float32/bfloat16 logits; targets: (N,) int class indices -> scalar loss."""
    N, C = inputs.shape

    if tile_n is None:
        # Size the logits tile to ~target_tile_bytes (multiple of 8 rows), capped by N.
        bytes_per_row = C * inputs.dtype.itemsize
        tile_n = _round_down(max(target_tile_bytes // bytes_per_row, 8), 8)
        tile_n = max(8, min(tile_n, _round_down(max(N, 8), 8)))
    assert tile_n % 8 == 0, "tile_n must be a multiple of 8 (sublane tiling)"

    num_tiles = pl.cdiv(N, tile_n)
    n_pad = num_tiles * tile_n
    targets2d = targets.reshape(N, 1).astype(jnp.int32)

    kernel = functools.partial(_ce_rows_kernel, n_total=N, tile_n=tile_n)

    ce_rows = pl.pallas_call(
        kernel,
        out_shape=jax.ShapeDtypeStruct((n_pad, 1), jnp.float32),
        grid_spec=pltpu.PrefetchScalarGridSpec(
            num_scalar_prefetch=0,
            grid=(num_tiles,),
            in_specs=[
                pl.BlockSpec((tile_n, C), lambda i: (i, 0)),   # logits tile (~target_tile_bytes)
                pl.BlockSpec((tile_n, 1), lambda i: (i, 0)),   # targets tile
            ],
            out_specs=pl.BlockSpec((tile_n, 1), lambda i: (i, 0)),  # per-row CE
        ),
        compiler_params=pltpu.CompilerParams(
            # Independent tiles: lets both v7x TensorCores stream; neutral on v5e/v6e.
            dimension_semantics=("parallel",),
        ),
    )(inputs, targets2d)

    # Scalar finalize in XLA (matches torch: focal modulation of the *mean* CE).
    ce = jnp.sum(ce_rows) / jnp.float32(N)
    pt = jnp.exp(-ce)
    return jnp.float32(alpha) * (jnp.float32(1.0) - pt) ** jnp.float32(gamma) * ce


def _focal_loss_ref(inputs, targets, alpha=1.0, gamma=2.0):
    """Pure-JAX reference matching the torch module's semantics."""
    x = inputs.astype(jnp.float32)
    lse = jax.nn.logsumexp(x, axis=-1)
    tgt = jnp.take_along_axis(x, targets[:, None].astype(jnp.int32), axis=-1)[:, 0]
    ce = jnp.mean(lse - tgt)
    pt = jnp.exp(-ce)
    return alpha * (1.0 - pt) ** gamma * ce


if __name__ == "__main__":
    key = jax.random.PRNGKey(0)
    k_logits, k_tgt = jax.random.split(key)

    N, C = 16, 32  # small demo shapes; tiling auto-sizes for large N
    inputs = jax.random.normal(k_logits, (N, C), dtype=jnp.float32)
    targets = jax.random.randint(k_tgt, (N,), 0, C, dtype=jnp.int32)

    loss = jax.block_until_ready(focal_loss(inputs, targets, alpha=1.0, gamma=2.0))
    ref = _focal_loss_ref(inputs, targets, alpha=1.0, gamma=2.0)
    assert jnp.allclose(loss, ref, rtol=1e-5, atol=1e-5), (loss, ref)

    # Ragged batch (N not a multiple of tile_n) exercises the in-kernel row mask.
    N2 = 13
    loss2 = jax.block_until_ready(
        focal_loss(inputs[:N2], targets[:N2], alpha=1.0, gamma=2.0, tile_n=8))
    ref2 = _focal_loss_ref(inputs[:N2], targets[:N2], alpha=1.0, gamma=2.0)
    assert jnp.allclose(loss2, ref2, rtol=1e-5, atol=1e-5), (loss2, ref2)

    print("KERNEL_OK")
</pallas_src>

<mosaic_0001>
module attributes {stable_mosaic.version = 11 : i64} {
  func.func @_ce_rows_kernel(%arg0: i32, %arg1: memref<16x32xf32, #tpu.memory_space<vmem>>, %arg2: memref<16x1xi32, #tpu.memory_space<vmem>>, %arg3: memref<16x1xf32, #tpu.memory_space<vmem>>) attributes {dimension_semantics = [#tpu.dimension_semantics<parallel>], iteration_bounds = array<i64: 1>, scalar_prefetch = 0 : i64, scratch_operands = 0 : i64, tpu.core_type = #tpu.core_type<tc>, window_params = [{transform_indices = @transform_0, window_bounds = array<i64: 16, 32>}, {transform_indices = @transform_1, window_bounds = array<i64: 16, 1>}, {transform_indices = @transform_2, window_bounds = array<i64: 16, 1>}]} {
    %c0 = arith.constant 0 : index
    %c0_0 = arith.constant 0 : index
    %0 = vector.load %arg1[%c0, %c0_0] : memref<16x32xf32, #tpu.memory_space<vmem>>, vector<16x32xf32>
    %c0_1 = arith.constant 0 : index
    %c0_2 = arith.constant 0 : index
    %1 = vector.load %arg2[%c0_1, %c0_2] : memref<16x1xi32, #tpu.memory_space<vmem>>, vector<16x1xi32>
    %c16_i32 = arith.constant 16 : i32
    %2 = arith.muli %arg0, %c16_i32 : i32
    %3 = tpu.iota {dimensions = array<i32: 0>} : vector<16x1xi32>
    %4 = vector.broadcast %2 : i32 to vector<16x1xi32>
    %5 = arith.addi %4, %3 : vector<16x1xi32>
    %c16_i32_3 = arith.constant 16 : i32
    %6 = vector.broadcast %c16_i32_3 : i32 to vector<16x1xi32>
    %7 = arith.cmpi slt, %5, %6 : vector<16x1xi32>
    %cst = arith.constant 0.000000e+00 : f32
    %8 = vector.shape_cast %7 : vector<16x1xi1> to vector<16x1xi1>
    %9 = vector.broadcast %8 : vector<16x1xi1> to vector<16x32xi1>
    %10 = vector.broadcast %cst : f32 to vector<16x32xf32>
    %11 = arith.select %9, %0, %10 : vector<16x32xi1>, vector<16x32xf32>
    %cst_4 = arith.constant dense<0xFF800000> : vector<16xf32>
    %12 = vector.multi_reduction <maximumf>, %11, %cst_4 [1] : vector<16x32xf32> to vector<16xf32>
    %13 = vector.shape_cast %12 : vector<16xf32> to vector<16x1xf32>
    %14 = vector.broadcast %13 : vector<16x1xf32> to vector<16x32xf32>
    %15 = arith.subf %11, %14 : vector<16x32xf32>
    %16 = math.exp %15 : vector<16x32xf32>
    %cst_5 = arith.constant dense<0.000000e+00> : vector<16xf32>
    %17 = vector.multi_reduction <add>, %16, %cst_5 [1] : vector<16x32xf32> to vector<16xf32>
    %18 = vector.shape_cast %17 : vector<16xf32> to vector<16x1xf32>
    %19 = math.log %18 : vector<16x1xf32>
    %20 = arith.addf %13, %19 : vector<16x1xf32>
    %21 = tpu.iota {dimensions = array<i32: 1>} : vector<16x32xi32>
    %22 = vector.broadcast %1 : vector<16x1xi32> to vector<16x32xi32>
    %23 = arith.cmpi eq, %21, %22 : vector<16x32xi32>
    %cst_6 = arith.constant 0.000000e+00 : f32
    %24 = vector.broadcast %cst_6 : f32 to vector<16x32xf32>
    %25 = arith.select %23, %11, %24 : vector<16x32xi1>, vector<16x32xf32>
    %cst_7 = arith.constant dense<0.000000e+00> : vector<16xf32>
    %26 = vector.multi_reduction <add>, %25, %cst_7 [1] : vector<16x32xf32> to vector<16xf32>
    %27 = vector.shape_cast %26 : vector<16xf32> to vector<16x1xf32>
    %28 = arith.subf %20, %27 : vector<16x1xf32>
    %cst_8 = arith.constant 0.000000e+00 : f32
    %29 = vector.broadcast %cst_8 : f32 to vector<16x1xf32>
    %30 = arith.select %7, %28, %29 : vector<16x1xi1>, vector<16x1xf32>
    %c0_9 = arith.constant 0 : index
    %c0_10 = arith.constant 0 : index
    %31 = vector.load %arg3[%c0_9, %c0_10] : memref<16x1xf32, #tpu.memory_space<vmem>>, vector<16x1xf32>
    tpu.vector_store %arg3[%c0_9, %c0_10], %30 {strides = array<i32>} : memref<16x1xf32, #tpu.memory_space<vmem>>, vector<16x1xf32>,
    return
  }
  func.func @transform_0(%arg0: i32) -> (i32, i32) {
    %c0_i32 = arith.constant 0 : i32
    %c0_i32_0 = arith.constant 0 : i32
    return %arg0, %c0_i32 : i32, i32
  }
  func.func @transform_1(%arg0: i32) -> (i32, i32) {
    %c0_i32 = arith.constant 0 : i32
    %c0_i32_0 = arith.constant 0 : i32
    return %arg0, %c0_i32 : i32, i32
  }
  func.func @transform_2(%arg0: i32) -> (i32, i32) {
    %c0_i32 = arith.constant 0 : i32
    %c0_i32_0 = arith.constant 0 : i32
    return %arg0, %c0_i32 : i32, i32
  }
}

</mosaic_0001>

<bundles_post_ra>
// kernel: tpu_custom_call.1
= control target key start
LH: loop header
LB: loop body
LE: loop exit
PB: predicated region body
PF: predicated region fallthrough
CT: control target
= control target key end

     0   :  { %vm30_vm0 = vcmask 261120   ;;  %v95_v2 = vmov 0   ;;  %v55_v11 = vlaneseq  ;;  %vm77_vm3 = vcmask 7168   ;;  %s135_s0 = inlined_call_operand.vmem [shape: f32[16,32], index: 0, kind: input, shape index: {}]   ;;  %s136_s1 = inlined_call_operand.vmem [shape: s32[16,1], index: 1, kind: input, shape index: {}]   ;;  %s137_s2 = inlined_call_operand.vmem [shape: f32[16,1], index: 2, kind: output, shape index: {}]  }
   0x1   :  { %v11_v0 = vld [vmem:[%s135_s0] sm:$0xff]  ;;  %v12_v1 = vld [vmem:[%s135_s0 + $0x8] sm:$0xff]  ;;  %85 = vset.pattern.permute.xlu1 %v95_v2  ;;  %86 = vset.pattern.permute.xlu0 %v95_v2 }
   0x2   :  { %v13_v3 = vld [vmem:[%s136_s1] sm:$0xff]  ;;  %v31_v4 = vsel %vm30_vm0, %v11_v0, -inf  ;;  %v14_v5 = vld [vmem:[%s136_s1 + $0x8] sm:$0xff]  ;;  %v34_v6 = vsel %vm30_vm0, %v12_v1, -inf  ;;  %v56_v15 = vand.u32 127, %v55_v11 }
   0x3   :  { %58 = vperm.xlu1 %85, %v13_v3   ;;  %32 = vmax.xlane.f32.xlu0 %v31_v4 }
   0x7   :  { %61 = vperm.xlu1 %85, %v14_v5   ;;  %35 = vmax.xlane.f32.xlu0 %v34_v6 }
  0x82   :  { %v59_v14 = vpop.permute.xlu1 %58 }
  0x83   :  { %vm63_vm1 = vcmp.eq.s32.totalorder %v56_v15, %v59_v14 }
  0x84   :  { %v65_v18 = vsel %vm63_vm1, %v11_v0, 0.0 }
  0x85   :  { %v67_v20 = vsel %vm30_vm0, %v65_v18, 0.0 }
  0x86   :  { %v62_v16 = vpop.permute.xlu1 %61 }
  0x87   :  { %vm64_vm2 = vcmp.eq.s32.totalorder %v56_v15, %v62_v16 }
  0x88   :  { %v66_v22 = vsel %vm64_vm2, %v12_v1, 0.0 }
  0x89   :  { %v70_v24 = vsel %vm30_vm0, %v66_v22, 0.0 }
  0x90   :  { %v33_v7 = vpop.xlane.xlu0 %32 }
  0x91   :  { %v37_v8 = vsub.f32 %v11_v0, %v33_v7 }
  0x93   :  { %v39_v9 = vmul.f32 1.442695, %v37_v8 }
  0x94   :  { %v36_v10 = vpop.xlane.xlu0 %35 }
  0x95   :  { %87 = vpow2.f32 %v39_v9  ;;  %v38_v12 = vsub.f32 %v12_v1, %v36_v10 }
  0x97   :  { %v41_v13 = vmul.f32 1.442695, %v38_v12 }
  0x99   :  { %89 = vpow2.f32 %v41_v13 }
  0x9f   :  { %v88_v17 = vpop.eup %87 }
  0xa0   :  { %v43_v19 = vsel %vm30_vm0, %v88_v17, 0.0 }
  0xa1   :  { %44 = vadd.xlane.f32.xlu0 %v43_v19 }
  0xa3   :  { %v90_v21 = vpop.eup %89 }
  0xa4   :  { %v46_v23 = vsel %vm30_vm0, %v90_v21, 0.0 }
  0xa5   :  { %47 = vadd.xlane.f32.xlu1 %v46_v23  ;;  %68 = vadd.xlane.f32.xlu0 %v67_v20 }
  0xa9   :  { %71 = vadd.xlane.f32.xlu0 %v70_v24 }
 0x12e   :  { %v45_v25 = vpop.xlane.xlu0 %44 }
 0x12f   :  { %91 = vlog2.f32 %v45_v25 }
 0x132   :  { %v48_v26 = vpop.xlane.xlu1 %47  ;;  %v69_v29 = vpop.xlane.xlu0 %68 }
 0x133   :  { %93 = vlog2.f32 %v48_v26 }
 0x136   :  { %v72_v35 = vpop.xlane.xlu0 %71 }
 0x139   :  { %v92_v27 = vpop.eup %91 }
 0x13a   :  { %v50_v28 = vmul.f32 0.6931472, %v92_v27 }
 0x13c   :  { %v53_v30 = vadd.f32 %v50_v28, %v33_v7 }
 0x13d   :  { %v94_v31 = vpop.eup %93 }
 0x13e   :  { %v52_v32 = vmul.f32 0.6931472, %v94_v31  ;;  %v73_v33 = vsub.f32 %v53_v30, %v69_v29 }
 0x140   :  { %78 = vst.msk [vmem:[%s137_s2] sm:$0xff] %vm77_vm3, %v73_v33  ;;  %v54_v34 = vadd.f32 %v52_v32, %v36_v10 }
 0x142   :  { %v74_v36 = vsub.f32 %v54_v34, %v72_v35 }
 0x144   :  { %79 = vst.msk [vmem:[%s137_s2 + $0x8] sm:$0xff] %vm77_vm3, %v74_v36 }

</bundles_post_ra>
